<compile_context>
chip_gen: v7x
topology: tpu7x:2x2x1
jax: 0.10.0
libtpu: 0.0.40
codegen_flags: <defaults>
</compile_context>

<pallas_src>
import jax
import jax.numpy as jnp
from jax.experimental import pallas as pl
from jax.experimental.pallas import tpu as pltpu

_MAX_BATCH_TILE = 1024   # lanes per grid step; plenty of VMEM headroom everywhere
_LANE = 128


def _policy_mlp_fm_kernel(x_ref, w1_ref, b1_ref, w2_ref, b2_ref, w3_ref, b3_ref,
                          o_ref):
    """One batch tile, feature-major: activations are (features, batch_tile).

    Weights are PyTorch-convention (out, in); biases are (out, 1) columns.
    All dots accumulate in f32; the batch tile fills the MXU's N/lane axis.
    """
    x = x_ref[...]                                                      # (obs, tb)

    h1 = jnp.dot(w1_ref[...], x, preferred_element_type=jnp.float32)   # (2*obs, tb)
    h1 = jnp.maximum(h1 + b1_ref[...], 0.0)                            # ReLU (f32)

    h2 = jnp.dot(w2_ref[...], h1, preferred_element_type=jnp.float32)  # (2*act, tb)
    h2 = jnp.maximum(h2 + b2_ref[...], 0.0)                            # ReLU (f32)

    out = jnp.dot(w3_ref[...], h2, preferred_element_type=jnp.float32)  # (act, tb)
    o_ref[...] = (out + b3_ref[...]).astype(o_ref.dtype)
    # TODO(synk): if a bundle dump ever shows VMEM spills with >50% ld/st slot
    # utilization at tb=1024, split this body into a lax.fori_loop(unroll=True)
    # over 128-lane sub-tiles instead of shrinking the DMA tile.


def prepare_params(params, dtype=jnp.float32):
    """One-time conversion (outside the hot path) of PyTorch-convention Linear
    params to the kernel layout.  Weights keep (out, in) - no transposes -
    and biases become (out, 1) columns that broadcast over the lane (batch)
    axis.  Biases stay f32 (tiny; the bias/ReLU epilogue is f32 anyway).
    Pass dtype=jnp.bfloat16 (and bf16 state) to halve streamed HBM bytes."""
    w = lambda k: jnp.asarray(params[k], dtype)
    b = lambda k: jnp.asarray(params[k], jnp.float32)[:, None]
    return (w("w1"), b("b1"), w("w2"), b("b2"), w("w3"), b("b3"))


def _round_up(x, m):
    return (x + m - 1) // m * m


def _pick_batch_tile(batch):
    if batch <= _LANE:
        # Single partial-lane block; block extent == full batch so the (8,128)
        # rule is satisfied via "equals the full array dim".
        return batch
    # >= 2 grid steps so the "parallel" axis actually splits across v7x's two
    # TensorCores; lane-aligned (multiple of 128); capped for step amortization.
    return min(_MAX_BATCH_TILE, _round_up(-(-batch // 2), _LANE))


@jax.jit
def _forward_fm(state_fm, w1, b1, w2, b2, w3, b3):
    """Feature-major hot path: state_fm (obs, B) -> actions (act, B)."""
    obs, batch = state_fm.shape
    h1_d, h2_d, act = w1.shape[0], w2.shape[0], w3.shape[0]
    dtype = state_fm.dtype

    tb = _pick_batch_tile(batch)
    # cdiv grid + Pallas masking of the partial final block: no jnp.pad of the
    # input and no out[:batch] slice, i.e. no extra HBM passes.
    grid = (pl.cdiv(batch, tb),)

    flops = 2 * batch * (obs * h1_d + h1_d * h2_d + h2_d * act)
    bytes_accessed = (
        state_fm.size * state_fm.dtype.itemsize
        + batch * act * jnp.dtype(dtype).itemsize
        + sum(a.size * a.dtype.itemsize for a in (w1, b1, w2, b2, w3, b3))
    )

    return pl.pallas_call(
        _policy_mlp_fm_kernel,
        out_shape=jax.ShapeDtypeStruct((act, batch), dtype),
        grid_spec=pltpu.PrefetchScalarGridSpec(
            num_scalar_prefetch=0,
            grid=grid,
            in_specs=[
                pl.BlockSpec((obs, tb), lambda i: (0, i)),   # state streams (lane-dense)
                pl.BlockSpec(w1.shape, lambda i: (0, 0)),    # weights/biases stay
                pl.BlockSpec(b1.shape, lambda i: (0, 0)),    # VMEM-resident across
                pl.BlockSpec(w2.shape, lambda i: (0, 0)),    # the whole grid via
                pl.BlockSpec(b2.shape, lambda i: (0, 0)),    # constant index_maps
                pl.BlockSpec(w3.shape, lambda i: (0, 0)),
                pl.BlockSpec(b3.shape, lambda i: (0, 0)),
            ],
            out_specs=pl.BlockSpec((act, tb), lambda i: (0, i)),  # lane-dense store
        ),
        compiler_params=pltpu.CompilerParams(
            dimension_semantics=("parallel",),   # megacore split on v7x
        ),
        cost_estimate=pl.CostEstimate(
            flops=flops, transcendentals=0, bytes_accessed=bytes_accessed),
    )(state_fm, w1, b1, w2, b2, w3, b3)


@jax.jit
def _forward_bm(state, w1, b1, w2, b2, w3, b3):
    # Batch-major convenience path (original module contract).  The two
    # boundary transposes are small extra XLA passes; callers that can hold
    # activations feature-major should use the *_fm entry point instead.
    return _forward_fm(state.T, w1, b1, w2, b2, w3, b3).T


def policy_network_forward_fm(state_fm, prepared_params):
    """state_fm: (obs, B) feature-major.  Returns (act, B)."""
    return _forward_fm(state_fm, *prepared_params)


def policy_network_forward(state, prepared_params):
    """state: (B, obs) batch-major (PyTorch convention).  Returns (B, act)."""
    return _forward_bm(state, *prepared_params)


def init_policy_params(key, observation_shape, action_shape):
    """Deterministic init matching PyTorch nn.Linear default (uniform +-1/sqrt(fan_in))."""
    dims = [
        (observation_shape * 2, observation_shape),   # input_layer
        (action_shape * 2, observation_shape * 2),    # intermediate_layer
        (action_shape, action_shape * 2),              # output_layer
    ]
    params = {}
    for i, (out_d, in_d) in enumerate(dims, start=1):
        key, kw, kb = jax.random.split(key, 3)
        bound = 1.0 / (in_d ** 0.5)
        params[f"w{i}"] = jax.random.uniform(
            kw, (out_d, in_d), jnp.float32, minval=-bound, maxval=bound)
        params[f"b{i}"] = jax.random.uniform(
            kb, (out_d,), jnp.float32, minval=-bound, maxval=bound)
    return params


def _reference(x, p):
    h = jnp.maximum(x @ p["w1"].T + p["b1"], 0.0)
    h = jnp.maximum(h @ p["w2"].T + p["b2"], 0.0)
    return h @ p["w3"].T + p["b3"]


if __name__ == "__main__":
    observation_shape = 16
    action_shape = 8

    key = jax.random.PRNGKey(0)
    key, k_small, k_big = jax.random.split(key, 3)

    params = init_policy_params(key, observation_shape, action_shape)
    prepared = prepare_params(params)   # one-time, outside the hot path (f32)

    # 1) Small batch, batch-major convenience path (single block).
    batch = 8
    state = jax.random.normal(k_small, (batch, observation_shape), jnp.float32)
    actions = policy_network_forward(state, prepared)
    jax.block_until_ready(actions)
    assert actions.shape == (batch, action_shape)
    assert jnp.allclose(actions, _reference(state, params), atol=1e-5, rtol=1e-5)

    # 2) Large, non-tile-multiple batch on the feature-major hot path:
    #    exercises the >=2-step grid and the masked partial final block
    #    (no pad / no slice HBM passes).
    batch_big = 1000
    state_big = jax.random.normal(
        k_big, (batch_big, observation_shape), jnp.float32)
    state_big_fm = state_big.T   # in a real pipeline the caller holds this layout upstream
    actions_fm = policy_network_forward_fm(state_big_fm, prepared)
    jax.block_until_ready(actions_fm)
    assert actions_fm.shape == (action_shape, batch_big)
    assert jnp.allclose(
        actions_fm.T, _reference(state_big, params), atol=1e-4, rtol=1e-4)

    # 3) bf16 streaming option (memory-bound kernel; biggest relative win on v5e).
    prepared_bf16 = prepare_params(params, dtype=jnp.bfloat16)
    actions_bf16 = policy_network_forward_fm(
        state_big_fm.astype(jnp.bfloat16), prepared_bf16)
    jax.block_until_ready(actions_bf16)
    assert actions_bf16.shape == (action_shape, batch_big)
    assert bool(jnp.isfinite(actions_bf16.astype(jnp.float32)).all())
    # Loose tolerance: only input/weight quantization error (accumulation is f32).
    assert jnp.allclose(actions_bf16.astype(jnp.float32).T,
                        _reference(state_big, params), atol=2e-1)

    # TODO(synk): sample_discrete_action / sample_continuous_action /
    # q_value_calculation are trivial jnp post-processing (argmax, sigmoid,
    # gather) on this kernel's output and are not kernelized.

    print("KERNEL_OK")
</pallas_src>

<mosaic_0001>
module attributes {stable_mosaic.version = 11 : i64} {
  func.func @_policy_mlp_fm_kernel(%arg0: i32, %arg1: memref<16x8xf32, #tpu.memory_space<vmem>>, %arg2: memref<32x16xf32, #tpu.memory_space<vmem>>, %arg3: memref<32x1xf32, #tpu.memory_space<vmem>>, %arg4: memref<16x32xf32, #tpu.memory_space<vmem>>, %arg5: memref<16x1xf32, #tpu.memory_space<vmem>>, %arg6: memref<8x16xf32, #tpu.memory_space<vmem>>, %arg7: memref<8x1xf32, #tpu.memory_space<vmem>>, %arg8: memref<8x8xf32, #tpu.memory_space<vmem>>) attributes {dimension_semantics = [#tpu.dimension_semantics<parallel>], iteration_bounds = array<i64: 1>, scalar_prefetch = 0 : i64, scratch_operands = 0 : i64, tpu.core_type = #tpu.core_type<tc>, window_params = [{transform_indices = @transform_0, window_bounds = array<i64: 16, 8>}, {pipeline_mode = #tpu.pipeline_mode<synchronous>, transform_indices = @transform_1, window_bounds = array<i64: 32, 16>}, {pipeline_mode = #tpu.pipeline_mode<synchronous>, transform_indices = @transform_2, window_bounds = array<i64: 32, 1>}, {pipeline_mode = #tpu.pipeline_mode<synchronous>, transform_indices = @transform_3, window_bounds = array<i64: 16, 32>}, {pipeline_mode = #tpu.pipeline_mode<synchronous>, transform_indices = @transform_4, window_bounds = array<i64: 16, 1>}, {pipeline_mode = #tpu.pipeline_mode<synchronous>, transform_indices = @transform_5, window_bounds = array<i64: 8, 16>}, {pipeline_mode = #tpu.pipeline_mode<synchronous>, transform_indices = @transform_6, window_bounds = array<i64: 8, 1>}, {transform_indices = @transform_7, window_bounds = array<i64: 8, 8>}]} {
    %c0 = arith.constant 0 : index
    %c0_0 = arith.constant 0 : index
    %0 = vector.load %arg1[%c0, %c0_0] : memref<16x8xf32, #tpu.memory_space<vmem>>, vector<16x8xf32>
    %c0_1 = arith.constant 0 : index
    %c0_2 = arith.constant 0 : index
    %1 = vector.load %arg2[%c0_1, %c0_2] : memref<32x16xf32, #tpu.memory_space<vmem>>, vector<32x16xf32>
    %cst = arith.constant dense<0.000000e+00> : vector<32x8xf32>
    %2 = tpu.matmul %1, %0, %cst {dimension_numbers = #tpu.dot_dimension_numbers<[1], [0], [0], [1], [0, 0, 1, 1], [], []>} : vector<32x16xf32>, vector<16x8xf32>, vector<32x8xf32> -> vector<32x8xf32>
    %c0_3 = arith.constant 0 : index
    %c0_4 = arith.constant 0 : index
    %3 = vector.load %arg3[%c0_3, %c0_4] : memref<32x1xf32, #tpu.memory_space<vmem>>, vector<32x1xf32>
    %4 = vector.broadcast %3 : vector<32x1xf32> to vector<32x8xf32>
    %5 = arith.addf %2, %4 : vector<32x8xf32>
    %cst_5 = arith.constant 0.000000e+00 : f32
    %6 = vector.broadcast %cst_5 : f32 to vector<32x8xf32>
    %7 = arith.maximumf %5, %6 : vector<32x8xf32>
    %c0_6 = arith.constant 0 : index
    %c0_7 = arith.constant 0 : index
    %8 = vector.load %arg4[%c0_6, %c0_7] : memref<16x32xf32, #tpu.memory_space<vmem>>, vector<16x32xf32>
    %cst_8 = arith.constant dense<0.000000e+00> : vector<16x8xf32>
    %9 = tpu.matmul %8, %7, %cst_8 {dimension_numbers = #tpu.dot_dimension_numbers<[1], [0], [0], [1], [0, 0, 1, 1], [], []>} : vector<16x32xf32>, vector<32x8xf32>, vector<16x8xf32> -> vector<16x8xf32>
    %c0_9 = arith.constant 0 : index
    %c0_10 = arith.constant 0 : index
    %10 = vector.load %arg5[%c0_9, %c0_10] : memref<16x1xf32, #tpu.memory_space<vmem>>, vector<16x1xf32>
    %11 = vector.broadcast %10 : vector<16x1xf32> to vector<16x8xf32>
    %12 = arith.addf %9, %11 : vector<16x8xf32>
    %cst_11 = arith.constant 0.000000e+00 : f32
    %13 = vector.broadcast %cst_11 : f32 to vector<16x8xf32>
    %14 = arith.maximumf %12, %13 : vector<16x8xf32>
    %c0_12 = arith.constant 0 : index
    %c0_13 = arith.constant 0 : index
    %15 = vector.load %arg6[%c0_12, %c0_13] : memref<8x16xf32, #tpu.memory_space<vmem>>, vector<8x16xf32>
    %cst_14 = arith.constant dense<0.000000e+00> : vector<8x8xf32>
    %16 = tpu.matmul %15, %14, %cst_14 {dimension_numbers = #tpu.dot_dimension_numbers<[1], [0], [0], [1], [0, 0, 1, 1], [], []>} : vector<8x16xf32>, vector<16x8xf32>, vector<8x8xf32> -> vector<8x8xf32>
    %c0_15 = arith.constant 0 : index
    %c0_16 = arith.constant 0 : index
    %17 = vector.load %arg7[%c0_15, %c0_16] : memref<8x1xf32, #tpu.memory_space<vmem>>, vector<8x1xf32>
    %18 = vector.broadcast %17 : vector<8x1xf32> to vector<8x8xf32>
    %19 = arith.addf %16, %18 : vector<8x8xf32>
    %c0_17 = arith.constant 0 : index
    %c0_18 = arith.constant 0 : index
    %20 = vector.load %arg8[%c0_17, %c0_18] : memref<8x8xf32, #tpu.memory_space<vmem>>, vector<8x8xf32>
    tpu.vector_store %arg8[%c0_17, %c0_18], %19 {strides = array<i32>} : memref<8x8xf32, #tpu.memory_space<vmem>>, vector<8x8xf32>,
    return
  }
  func.func @transform_0(%arg0: i32) -> (i32, i32) {
    %c0_i32 = arith.constant 0 : i32
    %c0_i32_0 = arith.constant 0 : i32
    return %c0_i32, %arg0 : i32, i32
  }
  func.func @transform_1(%arg0: i32) -> (i32, i32) {
    %c0_i32 = arith.constant 0 : i32
    %c0_i32_0 = arith.constant 0 : i32
    %c0_i32_1 = arith.constant 0 : i32
    return %c0_i32, %c0_i32_0 : i32, i32
  }
  func.func @transform_2(%arg0: i32) -> (i32, i32) {
    %c0_i32 = arith.constant 0 : i32
    %c0_i32_0 = arith.constant 0 : i32
    %c0_i32_1 = arith.constant 0 : i32
    return %c0_i32, %c0_i32_0 : i32, i32
  }
  func.func @transform_3(%arg0: i32) -> (i32, i32) {
    %c0_i32 = arith.constant 0 : i32
    %c0_i32_0 = arith.constant 0 : i32
    %c0_i32_1 = arith.constant 0 : i32
    return %c0_i32, %c0_i32_0 : i32, i32
  }
  func.func @transform_4(%arg0: i32) -> (i32, i32) {
    %c0_i32 = arith.constant 0 : i32
    %c0_i32_0 = arith.constant 0 : i32
    %c0_i32_1 = arith.constant 0 : i32
    return %c0_i32, %c0_i32_0 : i32, i32
  }
  func.func @transform_5(%arg0: i32) -> (i32, i32) {
    %c0_i32 = arith.constant 0 : i32
    %c0_i32_0 = arith.constant 0 : i32
    %c0_i32_1 = arith.constant 0 : i32
    return %c0_i32, %c0_i32_0 : i32, i32
  }
  func.func @transform_6(%arg0: i32) -> (i32, i32) {
    %c0_i32 = arith.constant 0 : i32
    %c0_i32_0 = arith.constant 0 : i32
    %c0_i32_1 = arith.constant 0 : i32
    return %c0_i32, %c0_i32_0 : i32, i32
  }
  func.func @transform_7(%arg0: i32) -> (i32, i32) {
    %c0_i32 = arith.constant 0 : i32
    %c0_i32_0 = arith.constant 0 : i32
    return %c0_i32, %arg0 : i32, i32
  }
}

</mosaic_0001>

<bundles_post_ra>
// kernel: _forward_fm.1
= control target key start
LH: loop header
LB: loop body
LE: loop exit
PB: predicated region body
PF: predicated region fallthrough
CT: control target
= control target key end

     0   :  { %vm57_vm0 = vcmask 130048   ;;  %v449_v4 = vmov 0   ;;  %s561_s0 = inlined_call_operand.vmem [shape: f32[16,8], index: 0, kind: input, shape index: {}]   ;;  %s562_s1 = inlined_call_operand.vmem [shape: f32[32,16], index: 1, kind: input, shape index: {}]   ;;  %s563_s2 = inlined_call_operand.vmem [shape: f32[32,1], index: 2, kind: input, shape index: {}]   ;;  %s564_s3 = inlined_call_operand.vmem [shape: f32[16,32], index: 3, kind: input, shape index: {}]   ;;  %s565_s4 = inlined_call_operand.vmem [shape: f32[16,1], index: 4, kind: input, shape index: {}]   ;;  %s566_s5 = inlined_call_operand.vmem [shape: f32[8,16], index: 5, kind: input, shape index: {}]   ;;  %s567_s6 = inlined_call_operand.vmem [shape: f32[8,1], index: 6, kind: input, shape index: {}]   ;;  %s568_s7 = inlined_call_operand.hbm [shape: f32[8,8], index: 7, kind: output, shape index: {}]  }
   0x1   :  { %v27_v0 = vld [vmem:[%s561_s0] sm:$0xff]  ;;  %v28_v1 = vld [vmem:[%s561_s0 + $0x8] sm:$0xff]  ;;  %423 = vset.pattern.permute.xlu0 %v449_v4  ;;  %424 = vset.pattern.permute.xlu1 %v449_v4  ;;  %v35_v6 = vld [vmem:[%s563_s2 + $0x10] sm:$0xff] }
   0x2   :  { %v29_v2 = vld [vmem:[%s562_s1] sm:$0xff]  ;;  %v403_v3 = vpack.c.bf16 %v28_v1, %v27_v0  ;;  %v30_v7 = vld [vmem:[%s562_s1 + $0x8] sm:$0xff]  ;;  %49 = vperm.xlu1 %424, %v35_v6  }
   0x3   :  { %379 = vmatprep.mubr.msk.f32.mxu0 %vm57_vm0, %v29_v2  ;;  %v33_v5 = vld [vmem:[%s563_s2] sm:$0xff]  ;;  %v34_v8 = vld [vmem:[%s563_s2 + $0x8] sm:$0xff] }
   0x4   :  { %404 = vmatprep.subr.bf16.mxu0 %v403_v3  ;;  %39 = vperm.xlu0 %423, %v33_v5  }
   0x5   :  { %406 = vmatpush3.bf16.msra.mxu0 %v403_v3 }
   0x6   :  { %12 = vsyncpa [#allocation3], 0  ;;  %v31_v9 = vld [vmem:[%s562_s1 + $0x10] sm:$0xff]  ;;  %v36_v10 = vld [vmem:[%s563_s2 + $0x18] sm:$0xff]  ;;  %vm173_vm1 = vcmask 261120   ;;  %v450_v35 = vmov 0.0|0.0  }
   0x7   :  { %v32_v11 = vld [vmem:[%s562_s1 + $0x18] sm:$0xff]  ;;  %v161_v12 = vld [vmem:[%s565_s4] sm:$0xff]  ;;  %54 = vperm.xlu1 %424, %v36_v10   ;;  %v162_v13 = vld [vmem:[%s565_s4 + $0x8] sm:$0xff]  ;;  %415 = vmatprep.subr.bf16.mxu0 %v450_v35  ;;  %vm451_vm2 = vmmov 0   ;;  %v452_v36 = vmov 0.0   ;;  %vm337_vm3 = vcmask 64512  }
   0x8   :  { %380 = vmatmul.mubr.msk.f32.vlgmr.msra.gmra.mrb[0].mxu0 %vm57_vm0, %v30_v7  ;;  %44 = vperm.xlu0 %423, %v34_v8   ;;  %v258_v14 = vld [vmem:[%s567_s6] sm:$0xff]  ;;  %v160_v34 = vld [vmem:[%s564_s3 + $0x8] sm:$0xff] }
   0x9   :  { %382 = vmatprep.mubr.msk.f32.mxu0 %vm57_vm0, %v31_v9  ;;  %v159_v15 = vld [vmem:[%s564_s3] sm:$0xff]  ;;  %s453_s3 = smov [#allocation2]  }
   0xa   :  { %393 = vmatprep.mubr.msk.f32.mxu1 %vm173_vm1, %v159_v15  ;;  %v257_v46 = vld [vmem:[%s566_s5] sm:$0xff]  ;;  %s345_s28 = sshll.u32 %s453_s3, 4  ;;  %s346_s28 = int_to_ptr.vmem [resolvable:$true] %s345_s28 }
   0xb   :  { %170 = vperm.xlu1 %424, %v162_v13   ;;  %s425_s29 = scalar_lea.vmem %s346_s28, 128  ;;  %p430_p1 = scmp.lt.s32.totalorder %s346_s28, %s346_s28 }
   0xc   :  { %383 = vmatmul.mubr.msk.f32.gmra.mrb[2].mxu0 %vm57_vm0, %v32_v11  ;;  %165 = vperm.xlu0 %423, %v161_v12   ;;  %p426_p0 = scmp.ne.s32.totalorder %s346_s28, %s425_s29  ;;  %p431_p2 = scmp.lt.s32.totalorder %s425_s29, %s425_s29 }
   0xd   :  { %400 = vmatprep.mubr.msk.f32.mxu0 %vm451_vm2, %v452_v36 }
   0xe   :  { %p432_p3 = por %p431_p2, %p430_p1 }
  0x10   :  { %261 = vperm.xlu0 %423, %v258_v14   ;;  %p433_p4 = pnand %p432_p3, %p426_p0 }
  0x81   :  { %v50_v17 = vpop.permute.xlu1 %49 }
  0x83   :  { %v40_v16 = vpop.permute.xlu0 %39 }
  0x86   :  { %v55_v24 = vpop.permute.xlu1 %54 }
  0x87   :  { %v45_v18 = vpop.permute.xlu0 %44 }
  0x8a   :  { %v171_v37 = vpop.permute.xlu1 %170 }
  0x8b   :  { %v166_v39 = vpop.permute.xlu0 %165 }
  0x8f   :  { %v262_v47 = vpop.permute.xlu0 %261 }
  0xdb   :  { %v381_v19 = vpop.f32.mrb[0].mxu0 }
  0xdc   :  { %v142_v20 = vadd.f32 %v381_v19, %v45_v18  ;;  %v136_v21 = vpop.f32.mrb[1].mxu0 }
  0xdd   :  { %v137_v22 = vadd.f32 %v136_v21, %v40_v16 }
  0xde   :  { %v156_v23 = vmax.f32 %v142_v20, 0.0 }
  0xdf   :  { %v155_v25 = vmax.f32 %v137_v22, 0.0  ;;  %v384_v26 = vpop.f32.mrb[2].mxu0 }
  0xe0   :  { %v152_v27 = vadd.f32 %v384_v26, %v55_v24  ;;  %v146_v28 = vpop.f32.mrb[3].mxu0 }
  0xe1   :  { %v147_v29 = vadd.f32 %v146_v28, %v50_v17  ;;  %v407_v30 = vpack.c.bf16 %v156_v23, %v155_v25 }
  0xe2   :  { %v158_v31 = vmax.f32 %v152_v27, 0.0 }
  0xe3   :  { %v157_v32 = vmax.f32 %v147_v29, 0.0  ;;  %408 = vmatprep.subr.bf16.mxu1 %v407_v30 }
  0xe4   :  { %410 = vmatpush3.bf16.msra.mxu1 %v407_v30 }
  0xe5   :  { %v411_v33 = vpack.c.bf16 %v158_v31, %v157_v32 }
  0xe7   :  { %412 = vmatprep.subr.bf16.mxu1 %v411_v33 }
  0xe8   :  { %414 = vmatpush3.bf16.msra.mxu1 %v411_v33 }
  0xeb   :  { %394 = vmatmul.mubr.msk.f32.vlgmr.msra.gmra.mrb[0].mxu1 %vm173_vm1, %v160_v34 }
 0x1be   :  { %v395_v38 = vpop.f32.mrb[0].mxu1 }
 0x1bf   :  { %v252_v40 = vadd.f32 %v395_v38, %v171_v37  ;;  %v246_v41 = vpop.f32.mrb[1].mxu1 }
 0x1c0   :  { %v247_v42 = vadd.f32 %v246_v41, %v166_v39 }
 0x1c1   :  { %v256_v43 = vmax.f32 %v252_v40, 0.0 }
 0x1c2   :  { %v255_v44 = vmax.f32 %v247_v42, 0.0 }
 0x1c4   :  { %v416_v45 = vpack.c.bf16 %v256_v43, %v255_v44 }
 0x1c6   :  { %417 = vmatpush3.bf16.msra.mxu0 %v416_v45 }
 0x1c9   :  { %401 = vmatmul.mubr.msk.f32.vlgmr.msra.gmra.mrb[4].mxu0 %vm57_vm0, %v257_v46 }
 0x29c   :  { %v333_v48 = vpop.f32.mrb[4].mxu0 }
 0x29d   :  { %v334_v49 = vadd.f32 %v333_v48, %v262_v47  ;;  %v402_v50 = vpop.f32.mrb[5].mxu0 }
 0x29f   :  { %338 = vst.msk [vmem:[#allocation2] sm:$0xff] %vm337_vm3, %v334_v49 }
 0x2a0   :  { %436 = shalt.err (!%p433_p4)
}
 0x2a1   :  { %s437_s8 = scalar_lea.hbm %s568_s7, 128 }
 0x2a2   :  { %p438_p5 = scmp.ne.s32.totalorder %s568_s7, %s437_s8  ;;  %p441_p6 = scmp.lt.u32.totalorder %s437_s8, %s568_s7 }
 0x2a4   :  { %p443_p7 = pnand %p441_p6, %p438_p5 }
 0x2a6   :  { %446 = shalt.err (!%p443_p7)
}
 0x2a7   :  { %348 = dma.vmem_to_hbm [thread:$0]  %s346_s28, 128, %s568_s7, [#allocation3]  }
 0x2a8   :  { %447 = dma.done.wait [#allocation3], 128  }
 0x2a9   :  { %448 = vsyncadd [#allocation3], 4294967168 }
 0x2aa   :  { %352 = vsyncpa [#allocation3], 1 }

</bundles_post_ra>
